<compile_context>
chip_gen: v7x
topology: tpu7x:2x2x1
jax: 0.10.0
libtpu: 0.0.40
codegen_flags: <defaults>
</compile_context>

<pallas_src>
import math
import functools

import jax
import jax.numpy as jnp
from jax import lax
from jax.experimental import pallas as pl
from jax.experimental.pallas import tpu as pltpu


def _round_up(x, m):
    return ((x + m - 1) // m) * m


def _vmem_cap_bytes():
    """Generation-aware scoped-VMEM cap (leave ~25% headroom for the compiler)."""
    try:
        cap = int(pltpu.get_tpu_info().vmem_capacity_bytes)
    except Exception:
        cap = 64 << 20  # conservative (v7x per-TC size)
    return max(int(cap * 0.75), 16 << 20)


def _projection_head_kernel(x_ref, w1_ref, b1_ref, w2_ref, b2_ref, o_ref):
    """out = gelu(x@W1+b1) @ W2 + b2 + (x@W1+b1) for one row tile (full width)."""
    # First linear (MXU, f32 accumulation) + bias.
    proj = jnp.dot(x_ref[...], w1_ref[...], preferred_element_type=jnp.float32)
    proj = proj + b1_ref[...].astype(jnp.float32)

    # Exact (erf) GELU to match PyTorch nn.GELU(); elementwise math stays in f32.
    h = 0.5 * proj * (1.0 + lax.erf(proj * 0.7071067811865476))

    # Second linear over the full output width; operands in native/matmul dtype.
    out = jnp.dot(h.astype(w2_ref.dtype), w2_ref[...],
                  preferred_element_type=jnp.float32)
    out = out + b2_ref[...].astype(jnp.float32)

    # Dropout is identity at inference (eval mode).
    # TODO(synk): training-mode dropout (pltpu.prng_random_bits mask) not implemented.

    # Residual add and store (lane-dense, full-width output tile).
    o_ref[...] = (out + proj).astype(o_ref.dtype)


@functools.partial(
    jax.jit,
    static_argnames=("proj_dim", "tile_m", "matmul_dtype", "single_buffer_consts"),
)
def _projection_head_call(x, w1_p, b1_p, w2_p, b2_p, *, proj_dim, tile_m,
                          matmul_dtype, single_buffer_consts):
    B, S, E = x.shape
    E_pad, P_pad = w1_p.shape
    M = B * S
    out_dt = x.dtype
    mdt = jnp.dtype(matmul_dtype) if matmul_dtype is not None else jnp.dtype(x.dtype)

    dsz = mdt.itemsize                       # x-tile dtype (MXU operand)
    wsz = jnp.dtype(w1_p.dtype).itemsize     # weight dtype
    odsz = jnp.dtype(out_dt).itemsize        # output dtype

    # --- row-tile selection against a generation-aware VMEM budget ------------
    cap = _vmem_cap_bytes()
    # Worst case (fallback double-buffered constants) so either path fits.
    resident_w = 2 * (E_pad * P_pad + P_pad * P_pad + 2 * P_pad) * wsz
    budget = max(cap - resident_w, 4 << 20)
    per_row = (2 * E_pad * dsz        # x tile (double buffered)
               + 2 * P_pad * odsz     # out tile (double buffered)
               + 3 * P_pad * 4)       # proj / h / out f32 temporaries
    M_rows = _round_up(M, 8)
    tm = _round_up(min(tile_m, M_rows), 8)
    while tm > 8 and tm * per_row > budget:
        tm = _round_up(tm // 2, 8)
    # v7x megacore: give both TensorCores at least one row tile when M allows.
    if M_rows >= 16 and (M_rows + tm - 1) // tm < 2:
        tm = _round_up((M_rows + 1) // 2, 8)

    M_pad = _round_up(M, tm)
    num_m = M_pad // tm

    # --- input: cast once to the matmul dtype, pad only if required -----------
    x2 = x.reshape(M, E).astype(mdt)
    if M_pad == M and E_pad == E:
        x_p = x2
    else:
        x_p = jnp.zeros((M_pad, E_pad), mdt).at[:M, :E].set(x2)

    # --- VMEM limit: actual need (+50% headroom), capped at the generation cap -
    wbuf = 1 if single_buffer_consts else 2
    need = (2 * tm * E_pad * dsz
            + 2 * tm * P_pad * odsz
            + wbuf * (E_pad * P_pad + P_pad * P_pad + 2 * P_pad) * wsz
            + 3 * tm * P_pad * 4)
    vmem_limit = int(min(cap, max(need + need // 2, 16 << 20)))

    cost = pl.CostEstimate(
        flops=2 * M_pad * E_pad * P_pad + 2 * M_pad * P_pad * P_pad,
        transcendentals=M_pad * P_pad,
        bytes_accessed=(x_p.size * dsz
                        + w1_p.size * wsz + w2_p.size * wsz
                        + b1_p.size * jnp.dtype(b1_p.dtype).itemsize
                        + b2_p.size * jnp.dtype(b2_p.dtype).itemsize
                        + M_pad * P_pad * odsz),
    )

    const_kw = {"pipeline_mode": pl.Buffered(1)} if single_buffer_consts else {}

    out_p = pl.pallas_call(
        _projection_head_kernel,
        out_shape=jax.ShapeDtypeStruct((M_pad, P_pad), out_dt),
        grid_spec=pltpu.PrefetchScalarGridSpec(
            num_scalar_prefetch=0,
            grid=(num_m,),
            in_specs=[
                pl.BlockSpec((tm, E_pad), lambda i: (i, 0)),                 # x rows
                pl.BlockSpec((E_pad, P_pad), lambda i: (0, 0), **const_kw),  # W1 (resident)
                pl.BlockSpec((1, P_pad), lambda i: (0, 0), **const_kw),      # b1
                pl.BlockSpec((P_pad, P_pad), lambda i: (0, 0), **const_kw),  # W2 (resident)
                pl.BlockSpec((1, P_pad), lambda i: (0, 0), **const_kw),      # b2
            ],
            out_specs=pl.BlockSpec((tm, P_pad), lambda i: (i, 0)),
        ),
        compiler_params=pltpu.CompilerParams(
            dimension_semantics=("parallel",),
            vmem_limit_bytes=vmem_limit,
        ),
        cost_estimate=cost,
    )(x_p, w1_p, b1_p, w2_p, b2_p)

    out = out_p
    if M_pad != M or P_pad != proj_dim:
        out = out_p[:M, :proj_dim]
    return out.reshape(B, S, proj_dim)


class ProjectionHeadPallas:
    """Pads / (optionally) casts weights ONCE; calls the fused Pallas kernel."""

    def __init__(self, w1_t, b1, w2_t, b2, *, tile_m=512, matmul_dtype=None):
        E, P = w1_t.shape
        assert w2_t.shape == (P, P) and b1.shape == (P,) and b2.shape == (P,)
        self.embedding_dim = E
        self.projection_dim = P
        self.tile_m = tile_m
        self.matmul_dtype = matmul_dtype
        wdt = matmul_dtype if matmul_dtype is not None else w1_t.dtype

        E_pad = _round_up(E, 128)
        P_pad = _round_up(P, 128)
        self.w1_p = jnp.zeros((E_pad, P_pad), wdt).at[:E, :P].set(w1_t.astype(wdt))
        self.b1_p = jnp.zeros((1, P_pad), b1.dtype).at[0, :P].set(b1)
        self.w2_p = jnp.zeros((P_pad, P_pad), wdt).at[:P, :P].set(w2_t.astype(wdt))
        self.b2_p = jnp.zeros((1, P_pad), b2.dtype).at[0, :P].set(b2)

        self._single_buffer_consts = True  # drop to default buffering on failure

    def __call__(self, x):
        kwargs = dict(proj_dim=self.projection_dim, tile_m=self.tile_m,
                      matmul_dtype=self.matmul_dtype)
        if self._single_buffer_consts:
            try:
                return _projection_head_call(x, self.w1_p, self.b1_p, self.w2_p,
                                             self.b2_p, single_buffer_consts=True,
                                             **kwargs)
            except Exception:
                # pipeline_mode=pl.Buffered(1) unsupported on this build; fall back.
                self._single_buffer_consts = False
        return _projection_head_call(x, self.w1_p, self.b1_p, self.w2_p, self.b2_p,
                                     single_buffer_consts=False, **kwargs)


# ------------------------------- references ---------------------------------

def _reference(x, w1_t, b1, w2_t, b2):
    projected = jnp.einsum("bse,ep->bsp", x, w1_t) + b1
    h = jax.nn.gelu(projected, approximate=False)
    out = jnp.einsum("bsp,pq->bsq", h, w2_t) + b2
    return out + projected


def _reference_mixed(x, w1_t, b1, w2_t, b2, mdt):
    """Reference matching the bf16-MXU-operand / f32-accumulation kernel path."""
    proj = jnp.einsum("bse,ep->bsp", x.astype(mdt), w1_t.astype(mdt),
                      preferred_element_type=jnp.float32) + b1
    h = jax.nn.gelu(proj, approximate=False).astype(mdt)
    out = jnp.einsum("bsp,pq->bsq", h, w2_t.astype(mdt),
                     preferred_element_type=jnp.float32) + b2
    return out + proj


def _make_params(key, embedding_dim, projection_dim):
    kw1, kb1, kw2, kb2 = jax.random.split(key, 4)
    bound1 = 1.0 / math.sqrt(embedding_dim)
    w1_t = jax.random.uniform(
        kw1, (embedding_dim, projection_dim), jnp.float32, -bound1, bound1)
    b1 = jax.random.uniform(kb1, (projection_dim,), jnp.float32, -bound1, bound1)
    bound2 = 1.0 / math.sqrt(projection_dim)
    w2_t = jax.random.uniform(
        kw2, (projection_dim, projection_dim), jnp.float32, -bound2, bound2)
    b2 = jax.random.uniform(kb2, (projection_dim,), jnp.float32, -bound2, bound2)
    return w1_t, b1, w2_t, b2


if __name__ == "__main__":
    key = jax.random.PRNGKey(0)
    k1, k2, k3, k4 = jax.random.split(key, 4)

    # Case 1: small shapes consistent with the module's forward (B, S, E) -> (B, S, P).
    B, S, E, P = 2, 8, 32, 64
    x = jax.random.normal(k1, (B, S, E), dtype=jnp.float32)
    w1_t, b1, w2_t, b2 = _make_params(k2, E, P)
    head = ProjectionHeadPallas(w1_t, b1, w2_t, b2, tile_m=512)
    out = jax.block_until_ready(head(x))
    ref = _reference(x, w1_t, b1, w2_t, b2)
    assert out.shape == (B, S, P)
    assert jnp.allclose(out, ref, atol=1e-4, rtol=1e-4), "mismatch vs reference (case 1)"

    # Case 2: exercises the ragged / padding path (M not multiple of 8, E/P not of 128).
    B2, S2, E2, P2 = 2, 5, 48, 96
    x2 = jax.random.normal(k3, (B2, S2, E2), dtype=jnp.float32)
    w1_t2, b1_2, w2_t2, b2_2 = _make_params(k4, E2, P2)
    head2 = ProjectionHeadPallas(w1_t2, b1_2, w2_t2, b2_2)
    out2 = jax.block_until_ready(head2(x2))
    ref2 = _reference(x2, w1_t2, b1_2, w2_t2, b2_2)
    assert out2.shape == (B2, S2, P2)
    assert jnp.allclose(out2, ref2, atol=1e-4, rtol=1e-4), "mismatch vs reference (case 2)"

    # Case 3: bf16 MXU-operand path (v6e/v7x optimization), f32 accumulation.
    head_bf16 = ProjectionHeadPallas(w1_t, b1, w2_t, b2, matmul_dtype=jnp.bfloat16)
    out3 = jax.block_until_ready(head_bf16(x))
    ref3 = _reference_mixed(x, w1_t, b1, w2_t, b2, jnp.bfloat16)
    assert out3.shape == (B, S, P)
    assert jnp.allclose(out3, ref3, atol=5e-3, rtol=5e-3), "mismatch vs reference (case 3)"

    print("KERNEL_OK")
</pallas_src>

<mosaic_0001>
module attributes {stable_mosaic.version = 11 : i64} {
  func.func @_projection_head_kernel(%arg0: i32, %arg1: memref<8x128xf32, #tpu.memory_space<vmem>>, %arg2: memref<128x128xf32, #tpu.memory_space<vmem>>, %arg3: memref<1x128xf32, #tpu.memory_space<vmem>>, %arg4: memref<128x128xf32, #tpu.memory_space<vmem>>, %arg5: memref<1x128xf32, #tpu.memory_space<vmem>>, %arg6: memref<8x128xf32, #tpu.memory_space<vmem>>) attributes {dimension_semantics = [#tpu.dimension_semantics<parallel>], iteration_bounds = array<i64: 2>, scalar_prefetch = 0 : i64, scratch_operands = 0 : i64, tpu.core_type = #tpu.core_type<tc>, window_params = [{transform_indices = @transform_0, window_bounds = array<i64: 8, 128>}, {pipeline_mode = #tpu.pipeline_mode<synchronous>, transform_indices = @transform_1, window_bounds = array<i64: 128, 128>}, {pipeline_mode = #tpu.pipeline_mode<synchronous>, transform_indices = @transform_2, window_bounds = array<i64: 1, 128>}, {pipeline_mode = #tpu.pipeline_mode<synchronous>, transform_indices = @transform_3, window_bounds = array<i64: 128, 128>}, {pipeline_mode = #tpu.pipeline_mode<synchronous>, transform_indices = @transform_4, window_bounds = array<i64: 1, 128>}, {transform_indices = @transform_5, window_bounds = array<i64: 8, 128>}]} {
    %c0 = arith.constant 0 : index
    %c0_0 = arith.constant 0 : index
    %0 = vector.load %arg1[%c0, %c0_0] : memref<8x128xf32, #tpu.memory_space<vmem>>, vector<8x128xf32>
    %c0_1 = arith.constant 0 : index
    %c0_2 = arith.constant 0 : index
    %1 = vector.load %arg2[%c0_1, %c0_2] : memref<128x128xf32, #tpu.memory_space<vmem>>, vector<128x128xf32>
    %cst = arith.constant dense<0.000000e+00> : vector<8x128xf32>
    %2 = tpu.matmul %0, %1, %cst {dimension_numbers = #tpu.dot_dimension_numbers<[1], [0], [0], [1], [0, 0, 1, 1], [], []>} : vector<8x128xf32>, vector<128x128xf32>, vector<8x128xf32> -> vector<8x128xf32>
    %c0_3 = arith.constant 0 : index
    %c0_4 = arith.constant 0 : index
    %3 = vector.load %arg3[%c0_3, %c0_4] : memref<1x128xf32, #tpu.memory_space<vmem>>, vector<1x128xf32>
    %4 = vector.broadcast %3 : vector<1x128xf32> to vector<8x128xf32>
    %5 = arith.addf %2, %4 : vector<8x128xf32>
    %cst_5 = arith.constant 5.000000e-01 : f32
    %6 = vector.broadcast %cst_5 : f32 to vector<8x128xf32>
    %7 = arith.mulf %6, %5 : vector<8x128xf32>
    %cst_6 = arith.constant 0.707106769 : f32
    %8 = vector.broadcast %cst_6 : f32 to vector<8x128xf32>
    %9 = arith.mulf %5, %8 : vector<8x128xf32>
    %10 = math.erf %9 : vector<8x128xf32>
    %cst_7 = arith.constant 1.000000e+00 : f32
    %11 = vector.broadcast %cst_7 : f32 to vector<8x128xf32>
    %12 = arith.addf %11, %10 : vector<8x128xf32>
    %13 = arith.mulf %7, %12 : vector<8x128xf32>
    %c0_8 = arith.constant 0 : index
    %c0_9 = arith.constant 0 : index
    %14 = vector.load %arg4[%c0_8, %c0_9] : memref<128x128xf32, #tpu.memory_space<vmem>>, vector<128x128xf32>
    %cst_10 = arith.constant dense<0.000000e+00> : vector<8x128xf32>
    %15 = tpu.matmul %13, %14, %cst_10 {dimension_numbers = #tpu.dot_dimension_numbers<[1], [0], [0], [1], [0, 0, 1, 1], [], []>} : vector<8x128xf32>, vector<128x128xf32>, vector<8x128xf32> -> vector<8x128xf32>
    %c0_11 = arith.constant 0 : index
    %c0_12 = arith.constant 0 : index
    %16 = vector.load %arg5[%c0_11, %c0_12] : memref<1x128xf32, #tpu.memory_space<vmem>>, vector<1x128xf32>
    %17 = vector.broadcast %16 : vector<1x128xf32> to vector<8x128xf32>
    %18 = arith.addf %15, %17 : vector<8x128xf32>
    %19 = arith.addf %18, %5 : vector<8x128xf32>
    %c0_13 = arith.constant 0 : index
    %c0_14 = arith.constant 0 : index
    %20 = vector.load %arg6[%c0_13, %c0_14] : memref<8x128xf32, #tpu.memory_space<vmem>>, vector<8x128xf32>
    tpu.vector_store %arg6[%c0_13, %c0_14], %19 {strides = array<i32>} : memref<8x128xf32, #tpu.memory_space<vmem>>, vector<8x128xf32>,
    return
  }
  func.func @transform_0(%arg0: i32) -> (i32, i32) {
    %c0_i32 = arith.constant 0 : i32
    %c0_i32_0 = arith.constant 0 : i32
    return %arg0, %c0_i32 : i32, i32
  }
  func.func @transform_1(%arg0: i32) -> (i32, i32) {
    %c0_i32 = arith.constant 0 : i32
    %c0_i32_0 = arith.constant 0 : i32
    %c0_i32_1 = arith.constant 0 : i32
    return %c0_i32, %c0_i32_0 : i32, i32
  }
  func.func @transform_2(%arg0: i32) -> (i32, i32) {
    %c0_i32 = arith.constant 0 : i32
    %c0_i32_0 = arith.constant 0 : i32
    %c0_i32_1 = arith.constant 0 : i32
    return %c0_i32, %c0_i32_0 : i32, i32
  }
  func.func @transform_3(%arg0: i32) -> (i32, i32) {
    %c0_i32 = arith.constant 0 : i32
    %c0_i32_0 = arith.constant 0 : i32
    %c0_i32_1 = arith.constant 0 : i32
    return %c0_i32, %c0_i32_0 : i32, i32
  }
  func.func @transform_4(%arg0: i32) -> (i32, i32) {
    %c0_i32 = arith.constant 0 : i32
    %c0_i32_0 = arith.constant 0 : i32
    %c0_i32_1 = arith.constant 0 : i32
    return %c0_i32, %c0_i32_0 : i32, i32
  }
  func.func @transform_5(%arg0: i32) -> (i32, i32) {
    %c0_i32 = arith.constant 0 : i32
    %c0_i32_0 = arith.constant 0 : i32
    return %arg0, %c0_i32 : i32, i32
  }
}

module attributes {stable_mosaic.version = 11 : i64} {
  func.func @_projection_head_kernel(%arg0: i32, %arg1: memref<8x128xf32, #tpu.memory_space<vmem>>, %arg2: memref<128x128xf32, #tpu.memory_space<vmem>>, %arg3: memref<1x128xf32, #tpu.memory_space<vmem>>, %arg4: memref<128x128xf32, #tpu.memory_space<vmem>>, %arg5: memref<1x128xf32, #tpu.memory_space<vmem>>, %arg6: memref<8x128xf32, #tpu.memory_space<vmem>>) attributes {dimension_semantics = [#tpu.dimension_semantics<parallel>], iteration_bounds = array<i64: 2>, scalar_prefetch = 0 : i64, scratch_operands = 0 : i64, tpu.core_type = #tpu.core_type<tc>, window_params = [{transform_indices = @transform_0, window_bounds = array<i64: 8, 128>}, {pipeline_mode = #tpu.pipeline_mode<synchronous>, transform_indices = @transform_1, window_bounds = array<i64: 128, 128>}, {pipeline_mode = #tpu.pipeline_mode<synchronous>, transform_indices = @transform_2, window_bounds = array<i64: 1, 128>}, {pipeline_mode = #tpu.pipeline_mode<synchronous>, transform_indices = @transform_3, window_bounds = array<i64: 128, 128>}, {pipeline_mode = #tpu.pipeline_mode<synchronous>, transform_indices = @transform_4, window_bounds = array<i64: 1, 128>}, {transform_indices = @transform_5, window_bounds = array<i64: 8, 128>}]} {
    %c0 = arith.constant 0 : index
    %c0_0 = arith.constant 0 : index
    %0 = vector.load %arg1[%c0, %c0_0] : memref<8x128xf32, #tpu.memory_space<vmem>>, vector<8x128xf32>
    %c0_1 = arith.constant 0 : index
    %c0_2 = arith.constant 0 : index
    %1 = vector.load %arg2[%c0_1, %c0_2] : memref<128x128xf32, #tpu.memory_space<vmem>>, vector<128x128xf32>
    %cst = arith.constant dense<0.000000e+00> : vector<8x128xf32>
    %2 = tpu.matmul %0, %1, %cst {dimension_numbers = #tpu.dot_dimension_numbers<[1], [0], [0], [1], [0, 0, 1, 1], [], []>} : vector<8x128xf32>, vector<128x128xf32>, vector<8x128xf32> -> vector<8x128xf32>
    %c0_3 = arith.constant 0 : index
    %c0_4 = arith.constant 0 : index
    %3 = vector.load %arg3[%c0_3, %c0_4] : memref<1x128xf32, #tpu.memory_space<vmem>>, vector<1x128xf32>
    %4 = vector.broadcast %3 : vector<1x128xf32> to vector<8x128xf32>
    %5 = arith.addf %2, %4 : vector<8x128xf32>
    %cst_5 = arith.constant 5.000000e-01 : f32
    %6 = vector.broadcast %cst_5 : f32 to vector<8x128xf32>
    %7 = arith.mulf %6, %5 : vector<8x128xf32>
    %cst_6 = arith.constant 0.707106769 : f32
    %8 = vector.broadcast %cst_6 : f32 to vector<8x128xf32>
    %9 = arith.mulf %5, %8 : vector<8x128xf32>
    %10 = math.erf %9 : vector<8x128xf32>
    %cst_7 = arith.constant 1.000000e+00 : f32
    %11 = vector.broadcast %cst_7 : f32 to vector<8x128xf32>
    %12 = arith.addf %11, %10 : vector<8x128xf32>
    %13 = arith.mulf %7, %12 : vector<8x128xf32>
    %c0_8 = arith.constant 0 : index
    %c0_9 = arith.constant 0 : index
    %14 = vector.load %arg4[%c0_8, %c0_9] : memref<128x128xf32, #tpu.memory_space<vmem>>, vector<128x128xf32>
    %cst_10 = arith.constant dense<0.000000e+00> : vector<8x128xf32>
    %15 = tpu.matmul %13, %14, %cst_10 {dimension_numbers = #tpu.dot_dimension_numbers<[1], [0], [0], [1], [0, 0, 1, 1], [], []>} : vector<8x128xf32>, vector<128x128xf32>, vector<8x128xf32> -> vector<8x128xf32>
    %c0_11 = arith.constant 0 : index
    %c0_12 = arith.constant 0 : index
    %16 = vector.load %arg5[%c0_11, %c0_12] : memref<1x128xf32, #tpu.memory_space<vmem>>, vector<1x128xf32>
    %17 = vector.broadcast %16 : vector<1x128xf32> to vector<8x128xf32>
    %18 = arith.addf %15, %17 : vector<8x128xf32>
    %19 = arith.addf %18, %5 : vector<8x128xf32>
    %c0_13 = arith.constant 0 : index
    %c0_14 = arith.constant 0 : index
    %20 = vector.load %arg6[%c0_13, %c0_14] : memref<8x128xf32, #tpu.memory_space<vmem>>, vector<8x128xf32>
    tpu.vector_store %arg6[%c0_13, %c0_14], %19 {strides = array<i32>} : memref<8x128xf32, #tpu.memory_space<vmem>>, vector<8x128xf32>,
    return
  }
  func.func @transform_0(%arg0: i32) -> (i32, i32) {
    %c0_i32 = arith.constant 0 : i32
    %c0_i32_0 = arith.constant 0 : i32
    return %arg0, %c0_i32 : i32, i32
  }
  func.func @transform_1(%arg0: i32) -> (i32, i32) {
    %c0_i32 = arith.constant 0 : i32
    %c0_i32_0 = arith.constant 0 : i32
    %c0_i32_1 = arith.constant 0 : i32
    return %c0_i32, %c0_i32_0 : i32, i32
  }
  func.func @transform_2(%arg0: i32) -> (i32, i32) {
    %c0_i32 = arith.constant 0 : i32
    %c0_i32_0 = arith.constant 0 : i32
    %c0_i32_1 = arith.constant 0 : i32
    return %c0_i32, %c0_i32_0 : i32, i32
  }
  func.func @transform_3(%arg0: i32) -> (i32, i32) {
    %c0_i32 = arith.constant 0 : i32
    %c0_i32_0 = arith.constant 0 : i32
    %c0_i32_1 = arith.constant 0 : i32
    return %c0_i32, %c0_i32_0 : i32, i32
  }
  func.func @transform_4(%arg0: i32) -> (i32, i32) {
    %c0_i32 = arith.constant 0 : i32
    %c0_i32_0 = arith.constant 0 : i32
    %c0_i32_1 = arith.constant 0 : i32
    return %c0_i32, %c0_i32_0 : i32, i32
  }
  func.func @transform_5(%arg0: i32) -> (i32, i32) {
    %c0_i32 = arith.constant 0 : i32
    %c0_i32_0 = arith.constant 0 : i32
    return %arg0, %c0_i32 : i32, i32
  }
}

</mosaic_0001>

<bundles_post_ra>
// kernel: _projection_head_call.1
= control target key start
LH: loop header
LB: loop body
LE: loop exit
PB: predicated region body
PF: predicated region fallthrough
CT: control target
= control target key end

     0   :  { %10 = vsyncpa [#allocation3], 0  ;;  %s953_s0 = inlined_call_operand.vmem [shape: f32[16,128], index: 0, kind: input, shape index: {}]   ;;  %s954_s1 = inlined_call_operand.hbm [shape: f32[128,128], index: 1, kind: input, shape index: {}]   ;;  %s955_s2 = inlined_call_operand.vmem [shape: f32[1,128], index: 2, kind: input, shape index: {}]   ;;  %s956_s3 = inlined_call_operand.hbm [shape: f32[128,128], index: 3, kind: input, shape index: {}]   ;;  %s957_s4 = inlined_call_operand.vmem [shape: f32[1,128], index: 4, kind: input, shape index: {}]   ;;  %s958_s5 = inlined_call_operand.vmem [shape: f32[16,128], index: 5, kind: output, shape index: {}]  }
   0x1   :  { %11 = vsyncpa [#allocation5], 0  ;;  %s831_s18 = smov 0  }
   0x2 LB: > { %s837_s19 = sadd.s32 4294967295, %s792_s18   ;;  %p521_p0 = scmp.ge.s32.totalorder %s792_s18, 1  ;;  %s792_s18 = sphi %s831_s18, %s17_s18  }
   0x3   : > { %p158_p1 = scmp.lt.s32.totalorder %s792_s18, 3  ;;  %s794_s20 = smov [#allocation2]  }
   0x4   : > { %s170_s21 = sshll.u32 %s794_s20, 4  ;;  %p959_p3 = scmp.eq.s32.totalorder %s837_s19, 0  ;;  %s171_s21 = int_to_ptr.vmem [resolvable:$true] %s170_s21 }
   0x5   : > { %p841_p2 = pnand %p521_p0, %p158_p1  ;;  %s795_s23 = smov [#allocation4]  }
   0x6   : > { %s186_s24 = sshll.u32 %s795_s23, 4  ;;  %s722_s28 = scalar_lea.hbm %s954_s1, 2048  ;;  %s854_s24 = int_to_ptr.vmem [resolvable:$true] %s186_s24 }
   0x7   : > { %s961_s22 = scalar_select %p841_p2, 1, 0 }
   0x8   : > { %p694_p4 = pneg %p841_p2  ;;  %p723_p6 = scmp.ne.s32.totalorder %s954_s1, %s722_s28 }
   0x9   : > { %p729_p10 = scmp.lt.u32.totalorder %s722_s28, %s954_s1 }
   0xa   : > { %p850_p5 = pnand %p959_p3, %p694_p4 }
   0xc   : > { %p724_p7 = pneg %p850_p5 }
   0xe   : > { %p725_p8 = pnand %p724_p7, %p723_p6 }
  0x10   : > { %p726_p9 = pneg %p725_p8 }
  0x12   : > { %p731_p11 = pnand %p729_p10, %p726_p9 }
  0x14   : > { %734 = shalt.err (!%p731_p11)
}
  0x15   : > { %s735_s8 = scalar_lea.vmem %s171_s21, 2048  ;;  %p743_p1 = scmp.lt.s32.totalorder %s171_s21, %s171_s21 }
  0x16   : > { %p736_p12 = scmp.ne.s32.totalorder %s171_s21, %s735_s8  ;;  %p744_p4 = scmp.lt.s32.totalorder %s735_s8, %s735_s8 }
  0x18   : > { %p738_p13 = pnand %p736_p12, %p724_p7  ;;  %p745_p3 = por %p744_p4, %p743_p1 }
  0x1a   : > { %p739_p0 = pneg %p738_p13 }
  0x1c   : > { %p746_p2 = pnand %p745_p3, %p739_p0 }
  0x1e   : > { %749 = shalt.err (!%p746_p2)
}
  0x1f   : > { %s796_s9 = smov 128   ;;  %s797_s10 = smov 8  }
  0x20   : > { %697 = dma.hbm_to_vmem [thread:$0]  (!%p850_p5), %s954_s1, 2048, %s171_s21, [#allocation3], %s796_s9, %s796_s9, %s797_s10  }
  0x21   : > { %s750_s15 = scalar_lea.hbm %s956_s3, 2048 }
  0x22   : > { %p751_p6 = scmp.ne.s32.totalorder %s956_s3, %s750_s15  ;;  %p757_p8 = scmp.lt.u32.totalorder %s750_s15, %s956_s3 }
  0x24   : > { %p753_p2 = pnand %p751_p6, %p724_p7 }
  0x26   : > { %p754_p3 = pneg %p753_p2 }
  0x28   : > { %p759_p9 = pnand %p757_p8, %p754_p3 }
  0x2a   : > { %762 = shalt.err (!%p759_p9)
}
  0x2b   : > { %s763_s21 = scalar_lea.vmem %s854_s24, 2048  ;;  %p771_p13 = scmp.lt.s32.totalorder %s854_s24, %s854_s24 }
  0x2c   : > { %p764_p10 = scmp.ne.s32.totalorder %s854_s24, %s763_s21  ;;  %p772_p0 = scmp.lt.s32.totalorder %s763_s21, %s763_s21 }
  0x2e   : > { %p766_p11 = pnand %p764_p10, %p724_p7  ;;  %p773_p1 = por %p772_p0, %p771_p13 }
  0x30   : > { %p767_p12 = pneg %p766_p11 }
  0x32   : > { %p774_p4 = pnand %p773_p1, %p767_p12 }
  0x34   : > { %777 = shalt.err (!%p774_p4)
}
  0x35   : > { %700 = dma.hbm_to_vmem [thread:$0]  (!%p850_p5), %s956_s3, 2048, %s854_s24, [#allocation5], %s796_s9, %s796_s9, %s797_s10  }
  0x36   : > { %p963_p6 = scmp.ne.s32.totalorder %s961_s22, 0 }
  0x37   : > { %p964_p2 = scmp.eq.s32.totalorder (!%p963_p6), %s837_s19, 0 }
  0x38   : > { %212 = sbr.rel (%p963_p6) target bundleno = 549 (0x225), region = 40 }
  0x3f   : > { %783 = dma.done.wait (%p964_p2), [#allocation3], 2048   ;;  %p965_p7 = pmov %p964_p2 }
  0x40   : > { %p966_p3 = pmov %p964_p2 }
  0x41   : > { %785 = vsyncadd (%p965_p7), [#allocation3], 4294965248 }
  0x42   : > { %787 = dma.done.wait (%p966_p3), [#allocation5], 2048   ;;  %p967_p8 = pmov %p964_p2 }
  0x43   : > { %v798_v0 = vmov 0.0|0.0   ;;  %vm799_vm0 = vmmov 0   ;;  %v800_v1 = vmov 0.0   ;;  %v251_v2 = vld [vmem:[#allocation2] sm:$0xff]  ;;  %v252_v3 = vld [vmem:[#allocation2 + $0x8] sm:$0xff]  ;;  %v253_v4 = vld [vmem:[#allocation2 + $0x10] sm:$0xff] }
  0x44   : > { %789 = vsyncadd (%p967_p8), [#allocation5], 4294965248  ;;  %638 = vmatprep.subr.bf16.mxu0 %v798_v0  ;;  %600 = vmatprep.mubr.msk.f32.mxu0 %vm799_vm0, %v800_v1  ;;  %v639_v5 = vpack.c.bf16 %v252_v3, %v251_v2  ;;  %v254_v6 = vld [vmem:[#allocation2 + $0x18] sm:$0xff]  ;;  %v255_v8 = vld [vmem:[#allocation2 + $0x20] sm:$0xff]  ;;  %p242_p5 = scmp.lt.s32.totalorder %s837_s19, 1 }
  0x45   : > { %662 = vmatprep.subr.bf16.mxu1 %v798_v0  ;;  %635 = vmatprep.mubr.msk.f32.mxu1 %vm799_vm0, %v800_v1  ;;  %v642_v7 = vpack.c.bf16 %v254_v6, %v253_v4  ;;  %v256_v9 = vld [vmem:[#allocation2 + $0x28] sm:$0xff]  ;;  %v349_v10 = vld [vmem:[#allocation4] sm:$0xff]  ;;  %v351_v12 = vld [vmem:[#allocation4 + $0x10] sm:$0xff] }
  0x46   : > { %640 = vmatpush3.bf16.msra.mxu0 %v639_v5  ;;  %v350_v11 = vld [vmem:[#allocation4 + $0x8] sm:$0xff]  ;;  %v352_v13 = vld [vmem:[#allocation4 + $0x18] sm:$0xff]  ;;  %v645_v14 = vpack.c.bf16 %v256_v9, %v255_v8  ;;  %v257_v16 = vld [vmem:[#allocation2 + $0x30] sm:$0xff]  ;;  %s969_s19 = smov (!%p242_p5, %s837_s19), 1 }
  0x47   : > { %641 = vmatprep.subr.bf16.mxu0 %v798_v0  ;;  %v663_v15 = vpack.c.bf16 %v350_v11, %v349_v10  ;;  %v258_v17 = vld [vmem:[#allocation2 + $0x38] sm:$0xff]  ;;  %v666_v18 = vpack.c.bf16 %v352_v13, %v351_v12  ;;  %v353_v19 = vld [vmem:[#allocation4 + $0x20] sm:$0xff]  ;;  %v354_v20 = vld [vmem:[#allocation4 + $0x28] sm:$0xff]  ;;  %s528_s22 = sshll.u32 %s969_s19, 3 }
  0x48   : > { %v648_v21 = vpack.c.bf16 %v258_v17, %v257_v16  ;;  %v259_v22 = vld [vmem:[#allocation2 + $0x40] sm:$0xff]  ;;  %v260_v23 = vld [vmem:[#allocation2 + $0x48] sm:$0xff]  ;;  %v669_v24 = vpack.c.bf16 %v354_v20, %v353_v19  ;;  %v261_v26 = vld [vmem:[#allocation2 + $0x50] sm:$0xff]  ;;  %s245_s28 = scalar_lea.vmem %s953_s0, %s528_s22  ;;  %s249_s10 = scalar_lea.vmem %s958_s5, %s528_s22 }
  0x49   : > { %664 = vmatpush3.bf16.msra.mxu1 %v663_v15  ;;  %v651_v25 = vpack.c.bf16 %v260_v23, %v259_v22  ;;  %v262_v27 = vld [vmem:[#allocation2 + $0x58] sm:$0xff]  ;;  %v263_v29 = vld [vmem:[#allocation2 + $0x60] sm:$0xff]  ;;  %v264_v30 = vld [vmem:[#allocation2 + $0x68] sm:$0xff] }
  0x4a   : > { %643 = vmatpush3.bf16.msra.mxu0 %v642_v7  ;;  %665 = vmatprep.subr.bf16.mxu1 %v798_v0  ;;  %v654_v28 = vpack.c.bf16 %v262_v27, %v261_v26  ;;  %v657_v31 = vpack.c.bf16 %v264_v30, %v263_v29  ;;  %v265_v32 = vld [vmem:[#allocation2 + $0x70] sm:$0xff]  ;;  %v266_v33 = vld [vmem:[#allocation2 + $0x78] sm:$0xff]  ;;  %v250_v35 = vld [vmem:[%s245_s28] sm:$0xff] }
  0x4b   : > { %644 = vmatprep.subr.bf16.mxu0 %v798_v0  ;;  %v660_v34 = vpack.c.bf16 %v266_v33, %v265_v32  ;;  %v355_v36 = vld [vmem:[#allocation4 + $0x30] sm:$0xff]  ;;  %v356_v37 = vld [vmem:[#allocation4 + $0x38] sm:$0xff]  ;;  %v357_v39 = vld [vmem:[#allocation4 + $0x40] sm:$0xff] }
  0x4c   : > { %v672_v38 = vpack.c.bf16 %v356_v37, %v355_v36  ;;  %v358_v40 = vld [vmem:[#allocation4 + $0x48] sm:$0xff]  ;;  %v359_v42 = vld [vmem:[#allocation4 + $0x50] sm:$0xff]  ;;  %v360_v43 = vld [vmem:[#allocation4 + $0x58] sm:$0xff] }
  0x4d   : > { %667 = vmatpush3.bf16.msra.mxu1 %v666_v18  ;;  %v675_v41 = vpack.c.bf16 %v358_v40, %v357_v39  ;;  %v678_v44 = vpack.c.bf16 %v360_v43, %v359_v42  ;;  %v361_v45 = vld [vmem:[#allocation4 + $0x60] sm:$0xff]  ;;  %v362_v46 = vld [vmem:[#allocation4 + $0x68] sm:$0xff]  ;;  %v363_v48 = vld [vmem:[#allocation4 + $0x70] sm:$0xff] }
  0x4e   : > { %646 = vmatpush3.bf16.msra.mxu0 %v645_v14  ;;  %668 = vmatprep.subr.bf16.mxu1 %v798_v0  ;;  %v681_v47 = vpack.c.bf16 %v362_v46, %v361_v45  ;;  %v364_v49 = vld [vmem:[#allocation4 + $0x78] sm:$0xff]  ;;  %v530_v51 = vld [vmem:[%s955_s2] ss:$0 sm:$0xff] }
  0x4f   : > { %647 = vmatprep.subr.bf16.mxu0 %v798_v0  ;;  %v684_v50 = vpack.c.bf16 %v364_v49, %v363_v48  ;;  %v531_v60 = vld [vmem:[%s957_s4] ss:$0 sm:$0xff] }
  0x51   : > { %670 = vmatpush3.bf16.msra.mxu1 %v669_v24 }
  0x52   : > { %649 = vmatpush3.bf16.msra.mxu0 %v648_v21  ;;  %671 = vmatprep.subr.bf16.mxu1 %v798_v0 }
  0x53   : > { %650 = vmatprep.subr.bf16.mxu0 %v798_v0 }
  0x55   : > { %673 = vmatpush3.bf16.msra.mxu1 %v672_v38 }
  0x56   : > { %652 = vmatpush3.bf16.msra.mxu0 %v651_v25  ;;  %674 = vmatprep.subr.bf16.mxu1 %v798_v0 }
  0x57   : > { %653 = vmatprep.subr.bf16.mxu0 %v798_v0 }
  0x59   : > { %676 = vmatpush3.bf16.msra.mxu1 %v675_v41 }
  0x5a   : > { %655 = vmatpush3.bf16.msra.mxu0 %v654_v28  ;;  %677 = vmatprep.subr.bf16.mxu1 %v798_v0 }
  0x5b   : > { %656 = vmatprep.subr.bf16.mxu0 %v798_v0 }
  0x5d   : > { %679 = vmatpush3.bf16.msra.mxu1 %v678_v44 }
  0x5e   : > { %658 = vmatpush3.bf16.msra.mxu0 %v657_v31  ;;  %680 = vmatprep.subr.bf16.mxu1 %v798_v0 }
  0x5f   : > { %659 = vmatprep.subr.bf16.mxu0 %v798_v0 }
  0x61   : > { %682 = vmatpush3.bf16.msra.mxu1 %v681_v47 }
  0x62   : > { %661 = vmatpush3.bf16.msra.mxu0 %v660_v34  ;;  %683 = vmatprep.subr.bf16.mxu1 %v798_v0 }
  0x65   : > { %601 = vmatmul.mubr.f32.vlgmr.msra.gmra.mrb[0].mxu0 %v250_v35  ;;  %685 = vmatpush3.bf16.msra.mxu1 %v684_v50 }
 0x138   : > { %v340_v52 = vpop.f32.mrb[0].mxu0 }
 0x139   : > { %v341_v53 = vadd.f32 %v530_v51, %v340_v52  ;;  %v602_v54 = vpop.f32.mrb[1].mxu0 }
 0x13b   : > { %v345_v55 = vmul.f32 0.70710677, %v341_v53  ;;  %v344_v57 = vmul.f32 0.5, %v341_v53 }
 0x13d   : > { %720 = verf.f32 %v345_v55 }
 0x147   : > { %v721_v56 = vpop.eup %720 }
 0x148   : > { %v347_v58 = vadd.f32 1.0, %v721_v56 }
 0x14a   : > { %v348_v59 = vmul.f32 %v347_v58, %v344_v57 }
 0x14c   : > { %636 = vmatmul.mubr.f32.vlgmr.msra.gmra.mrb[0].mxu1 %v348_v59 }
 0x21f   : > { %v438_v61 = vpop.f32.mrb[0].mxu1 }
 0x220   : > { %v439_v62 = vadd.f32 %v531_v60, %v438_v61  ;;  %v637_v63 = vpop.f32.mrb[1].mxu1 }
 0x222   : > { %v442_v0 = vadd.f32 %v439_v62, %v341_v53 }
 0x224   : > { %443 = vst [vmem:[%s249_s10] sm:$0xff] %v442_v0 }
 0x225 PF: > { %s17_s18 = sadd.s32 1, %s792_s18  }
 0x226   : > { %p14_p9 = scmp.ge.s32.totalorder %s17_s18, 4  }
 0x228   :  { %16 = sbr.rel (!%p14_p9) target bundleno = 2 (0x2), region = 79 }
 0x22f   :  { %463 = vsyncpa [#allocation3], 1 }
 0x230   :  { %465 = vsyncpa [#allocation3 + $0x1], 1 }
 0x231   :  { %466 = vsyncpa [#allocation5], 1 }

// kernel: _projection_head_call.1
= control target key start
LH: loop header
LB: loop body
LE: loop exit
PB: predicated region body
PF: predicated region fallthrough
CT: control target
= control target key end

     0   :  { %10 = vsyncpa [#allocation3], 0  ;;  %s953_s0 = inlined_call_operand.vmem [shape: f32[16,128], index: 0, kind: input, shape index: {}]   ;;  %s954_s1 = inlined_call_operand.hbm [shape: f32[128,128], index: 1, kind: input, shape index: {}]   ;;  %s955_s2 = inlined_call_operand.vmem [shape: f32[1,128], index: 2, kind: input, shape index: {}]   ;;  %s956_s3 = inlined_call_operand.hbm [shape: f32[128,128], index: 3, kind: input, shape index: {}]   ;;  %s957_s4 = inlined_call_operand.vmem [shape: f32[1,128], index: 4, kind: input, shape index: {}]   ;;  %s958_s5 = inlined_call_operand.vmem [shape: f32[16,128], index: 5, kind: output, shape index: {}]  }
   0x1   :  { %11 = vsyncpa [#allocation5], 0  ;;  %s831_s18 = smov 0  }
   0x2 LB: > { %s837_s19 = sadd.s32 4294967295, %s792_s18   ;;  %p521_p0 = scmp.ge.s32.totalorder %s792_s18, 1  ;;  %s792_s18 = sphi %s831_s18, %s17_s18  }
   0x3   : > { %p158_p1 = scmp.lt.s32.totalorder %s792_s18, 3  ;;  %s794_s20 = smov [#allocation2]  }
   0x4   : > { %s170_s21 = sshll.u32 %s794_s20, 4  ;;  %p959_p3 = scmp.eq.s32.totalorder %s837_s19, 0  ;;  %s171_s21 = int_to_ptr.vmem [resolvable:$true] %s170_s21 }
   0x5   : > { %p841_p2 = pnand %p521_p0, %p158_p1  ;;  %s795_s23 = smov [#allocation4]  }
   0x6   : > { %s186_s24 = sshll.u32 %s795_s23, 4  ;;  %s722_s28 = scalar_lea.hbm %s954_s1, 2048  ;;  %s854_s24 = int_to_ptr.vmem [resolvable:$true] %s186_s24 }
   0x7   : > { %s961_s22 = scalar_select %p841_p2, 1, 0 }
   0x8   : > { %p694_p4 = pneg %p841_p2  ;;  %p723_p6 = scmp.ne.s32.totalorder %s954_s1, %s722_s28 }
   0x9   : > { %p729_p10 = scmp.lt.u32.totalorder %s722_s28, %s954_s1 }
   0xa   : > { %p850_p5 = pnand %p959_p3, %p694_p4 }
   0xc   : > { %p724_p7 = pneg %p850_p5 }
   0xe   : > { %p725_p8 = pnand %p724_p7, %p723_p6 }
  0x10   : > { %p726_p9 = pneg %p725_p8 }
  0x12   : > { %p731_p11 = pnand %p729_p10, %p726_p9 }
  0x14   : > { %734 = shalt.err (!%p731_p11)
}
  0x15   : > { %s735_s8 = scalar_lea.vmem %s171_s21, 2048  ;;  %p743_p1 = scmp.lt.s32.totalorder %s171_s21, %s171_s21 }
  0x16   : > { %p736_p12 = scmp.ne.s32.totalorder %s171_s21, %s735_s8  ;;  %p744_p4 = scmp.lt.s32.totalorder %s735_s8, %s735_s8 }
  0x18   : > { %p738_p13 = pnand %p736_p12, %p724_p7  ;;  %p745_p3 = por %p744_p4, %p743_p1 }
  0x1a   : > { %p739_p0 = pneg %p738_p13 }
  0x1c   : > { %p746_p2 = pnand %p745_p3, %p739_p0 }
  0x1e   : > { %749 = shalt.err (!%p746_p2)
}
  0x1f   : > { %s796_s9 = smov 128   ;;  %s797_s10 = smov 8  }
  0x20   : > { %697 = dma.hbm_to_vmem [thread:$0]  (!%p850_p5), %s954_s1, 2048, %s171_s21, [#allocation3], %s796_s9, %s796_s9, %s797_s10  }
  0x21   : > { %s750_s15 = scalar_lea.hbm %s956_s3, 2048 }
  0x22   : > { %p751_p6 = scmp.ne.s32.totalorder %s956_s3, %s750_s15  ;;  %p757_p8 = scmp.lt.u32.totalorder %s750_s15, %s956_s3 }
  0x24   : > { %p753_p2 = pnand %p751_p6, %p724_p7 }
  0x26   : > { %p754_p3 = pneg %p753_p2 }
  0x28   : > { %p759_p9 = pnand %p757_p8, %p754_p3 }
  0x2a   : > { %762 = shalt.err (!%p759_p9)
}
  0x2b   : > { %s763_s21 = scalar_lea.vmem %s854_s24, 2048  ;;  %p771_p13 = scmp.lt.s32.totalorder %s854_s24, %s854_s24 }
  0x2c   : > { %p764_p10 = scmp.ne.s32.totalorder %s854_s24, %s763_s21  ;;  %p772_p0 = scmp.lt.s32.totalorder %s763_s21, %s763_s21 }
  0x2e   : > { %p766_p11 = pnand %p764_p10, %p724_p7  ;;  %p773_p1 = por %p772_p0, %p771_p13 }
  0x30   : > { %p767_p12 = pneg %p766_p11 }
  0x32   : > { %p774_p4 = pnand %p773_p1, %p767_p12 }
  0x34   : > { %777 = shalt.err (!%p774_p4)
}
  0x35   : > { %700 = dma.hbm_to_vmem [thread:$0]  (!%p850_p5), %s956_s3, 2048, %s854_s24, [#allocation5], %s796_s9, %s796_s9, %s797_s10  }
  0x36   : > { %p963_p6 = scmp.ne.s32.totalorder %s961_s22, 0 }
  0x37   : > { %p964_p2 = scmp.eq.s32.totalorder (!%p963_p6), %s837_s19, 0 }
  0x38   : > { %212 = sbr.rel (%p963_p6) target bundleno = 549 (0x225), region = 40 }
  0x3f   : > { %783 = dma.done.wait (%p964_p2), [#allocation3], 2048   ;;  %p965_p7 = pmov %p964_p2 }
  0x40   : > { %p966_p3 = pmov %p964_p2 }
  0x41   : > { %785 = vsyncadd (%p965_p7), [#allocation3], 4294965248 }
  0x42   : > { %787 = dma.done.wait (%p966_p3), [#allocation5], 2048   ;;  %p967_p8 = pmov %p964_p2 }
  0x43   : > { %v798_v0 = vmov 0.0|0.0   ;;  %vm799_vm0 = vmmov 0   ;;  %v800_v1 = vmov 0.0   ;;  %v251_v2 = vld [vmem:[#allocation2] sm:$0xff]  ;;  %v252_v3 = vld [vmem:[#allocation2 + $0x8] sm:$0xff]  ;;  %v253_v4 = vld [vmem:[#allocation2 + $0x10] sm:$0xff] }
  0x44   : > { %789 = vsyncadd (%p967_p8), [#allocation5], 4294965248  ;;  %638 = vmatprep.subr.bf16.mxu0 %v798_v0  ;;  %600 = vmatprep.mubr.msk.f32.mxu0 %vm799_vm0, %v800_v1  ;;  %v639_v5 = vpack.c.bf16 %v252_v3, %v251_v2  ;;  %v254_v6 = vld [vmem:[#allocation2 + $0x18] sm:$0xff]  ;;  %v255_v8 = vld [vmem:[#allocation2 + $0x20] sm:$0xff]  ;;  %p242_p5 = scmp.lt.s32.totalorder %s837_s19, 1 }
  0x45   : > { %662 = vmatprep.subr.bf16.mxu1 %v798_v0  ;;  %635 = vmatprep.mubr.msk.f32.mxu1 %vm799_vm0, %v800_v1  ;;  %v642_v7 = vpack.c.bf16 %v254_v6, %v253_v4  ;;  %v256_v9 = vld [vmem:[#allocation2 + $0x28] sm:$0xff]  ;;  %v349_v10 = vld [vmem:[#allocation4] sm:$0xff]  ;;  %v351_v12 = vld [vmem:[#allocation4 + $0x10] sm:$0xff] }
  0x46   : > { %640 = vmatpush3.bf16.msra.mxu0 %v639_v5  ;;  %v350_v11 = vld [vmem:[#allocation4 + $0x8] sm:$0xff]  ;;  %v352_v13 = vld [vmem:[#allocation4 + $0x18] sm:$0xff]  ;;  %v645_v14 = vpack.c.bf16 %v256_v9, %v255_v8  ;;  %v257_v16 = vld [vmem:[#allocation2 + $0x30] sm:$0xff]  ;;  %s969_s19 = smov (!%p242_p5, %s837_s19), 1 }
  0x47   : > { %641 = vmatprep.subr.bf16.mxu0 %v798_v0  ;;  %v663_v15 = vpack.c.bf16 %v350_v11, %v349_v10  ;;  %v258_v17 = vld [vmem:[#allocation2 + $0x38] sm:$0xff]  ;;  %v666_v18 = vpack.c.bf16 %v352_v13, %v351_v12  ;;  %v353_v19 = vld [vmem:[#allocation4 + $0x20] sm:$0xff]  ;;  %v354_v20 = vld [vmem:[#allocation4 + $0x28] sm:$0xff]  ;;  %s528_s22 = sshll.u32 %s969_s19, 3 }
  0x48   : > { %v648_v21 = vpack.c.bf16 %v258_v17, %v257_v16  ;;  %v259_v22 = vld [vmem:[#allocation2 + $0x40] sm:$0xff]  ;;  %v260_v23 = vld [vmem:[#allocation2 + $0x48] sm:$0xff]  ;;  %v669_v24 = vpack.c.bf16 %v354_v20, %v353_v19  ;;  %v261_v26 = vld [vmem:[#allocation2 + $0x50] sm:$0xff]  ;;  %s245_s28 = scalar_lea.vmem %s953_s0, %s528_s22  ;;  %s249_s10 = scalar_lea.vmem %s958_s5, %s528_s22 }
  0x49   : > { %664 = vmatpush3.bf16.msra.mxu1 %v663_v15  ;;  %v651_v25 = vpack.c.bf16 %v260_v23, %v259_v22  ;;  %v262_v27 = vld [vmem:[#allocation2 + $0x58] sm:$0xff]  ;;  %v263_v29 = vld [vmem:[#allocation2 + $0x60] sm:$0xff]  ;;  %v264_v30 = vld [vmem:[#allocation2 + $0x68] sm:$0xff] }
  0x4a   : > { %643 = vmatpush3.bf16.msra.mxu0 %v642_v7  ;;  %665 = vmatprep.subr.bf16.mxu1 %v798_v0  ;;  %v654_v28 = vpack.c.bf16 %v262_v27, %v261_v26  ;;  %v657_v31 = vpack.c.bf16 %v264_v30, %v263_v29  ;;  %v265_v32 = vld [vmem:[#allocation2 + $0x70] sm:$0xff]  ;;  %v266_v33 = vld [vmem:[#allocation2 + $0x78] sm:$0xff]  ;;  %v250_v35 = vld [vmem:[%s245_s28] sm:$0xff] }
  0x4b   : > { %644 = vmatprep.subr.bf16.mxu0 %v798_v0  ;;  %v660_v34 = vpack.c.bf16 %v266_v33, %v265_v32  ;;  %v355_v36 = vld [vmem:[#allocation4 + $0x30] sm:$0xff]  ;;  %v356_v37 = vld [vmem:[#allocation4 + $0x38] sm:$0xff]  ;;  %v357_v39 = vld [vmem:[#allocation4 + $0x40] sm:$0xff] }
  0x4c   : > { %v672_v38 = vpack.c.bf16 %v356_v37, %v355_v36  ;;  %v358_v40 = vld [vmem:[#allocation4 + $0x48] sm:$0xff]  ;;  %v359_v42 = vld [vmem:[#allocation4 + $0x50] sm:$0xff]  ;;  %v360_v43 = vld [vmem:[#allocation4 + $0x58] sm:$0xff] }
  0x4d   : > { %667 = vmatpush3.bf16.msra.mxu1 %v666_v18  ;;  %v675_v41 = vpack.c.bf16 %v358_v40, %v357_v39  ;;  %v678_v44 = vpack.c.bf16 %v360_v43, %v359_v42  ;;  %v361_v45 = vld [vmem:[#allocation4 + $0x60] sm:$0xff]  ;;  %v362_v46 = vld [vmem:[#allocation4 + $0x68] sm:$0xff]  ;;  %v363_v48 = vld [vmem:[#allocation4 + $0x70] sm:$0xff] }
  0x4e   : > { %646 = vmatpush3.bf16.msra.mxu0 %v645_v14  ;;  %668 = vmatprep.subr.bf16.mxu1 %v798_v0  ;;  %v681_v47 = vpack.c.bf16 %v362_v46, %v361_v45  ;;  %v364_v49 = vld [vmem:[#allocation4 + $0x78] sm:$0xff]  ;;  %v530_v51 = vld [vmem:[%s955_s2] ss:$0 sm:$0xff] }
  0x4f   : > { %647 = vmatprep.subr.bf16.mxu0 %v798_v0  ;;  %v684_v50 = vpack.c.bf16 %v364_v49, %v363_v48  ;;  %v531_v60 = vld [vmem:[%s957_s4] ss:$0 sm:$0xff] }
  0x51   : > { %670 = vmatpush3.bf16.msra.mxu1 %v669_v24 }
  0x52   : > { %649 = vmatpush3.bf16.msra.mxu0 %v648_v21  ;;  %671 = vmatprep.subr.bf16.mxu1 %v798_v0 }
  0x53   : > { %650 = vmatprep.subr.bf16.mxu0 %v798_v0 }
  0x55   : > { %673 = vmatpush3.bf16.msra.mxu1 %v672_v38 }
  0x56   : > { %652 = vmatpush3.bf16.msra.mxu0 %v651_v25  ;;  %674 = vmatprep.subr.bf16.mxu1 %v798_v0 }
  0x57   : > { %653 = vmatprep.subr.bf16.mxu0 %v798_v0 }
  0x59   : > { %676 = vmatpush3.bf16.msra.mxu1 %v675_v41 }
  0x5a   : > { %655 = vmatpush3.bf16.msra.mxu0 %v654_v28  ;;  %677 = vmatprep.subr.bf16.mxu1 %v798_v0 }
  0x5b   : > { %656 = vmatprep.subr.bf16.mxu0 %v798_v0 }
  0x5d   : > { %679 = vmatpush3.bf16.msra.mxu1 %v678_v44 }
  0x5e   : > { %658 = vmatpush3.bf16.msra.mxu0 %v657_v31  ;;  %680 = vmatprep.subr.bf16.mxu1 %v798_v0 }
  0x5f   : > { %659 = vmatprep.subr.bf16.mxu0 %v798_v0 }
  0x61   : > { %682 = vmatpush3.bf16.msra.mxu1 %v681_v47 }
  0x62   : > { %661 = vmatpush3.bf16.msra.mxu0 %v660_v34  ;;  %683 = vmatprep.subr.bf16.mxu1 %v798_v0 }
  0x65   : > { %601 = vmatmul.mubr.f32.vlgmr.msra.gmra.mrb[0].mxu0 %v250_v35  ;;  %685 = vmatpush3.bf16.msra.mxu1 %v684_v50 }
 0x138   : > { %v340_v52 = vpop.f32.mrb[0].mxu0 }
 0x139   : > { %v341_v53 = vadd.f32 %v530_v51, %v340_v52  ;;  %v602_v54 = vpop.f32.mrb[1].mxu0 }
 0x13b   : > { %v345_v55 = vmul.f32 0.70710677, %v341_v53  ;;  %v344_v57 = vmul.f32 0.5, %v341_v53 }
 0x13d   : > { %720 = verf.f32 %v345_v55 }
 0x147   : > { %v721_v56 = vpop.eup %720 }
 0x148   : > { %v347_v58 = vadd.f32 1.0, %v721_v56 }
 0x14a   : > { %v348_v59 = vmul.f32 %v347_v58, %v344_v57 }
 0x14c   : > { %636 = vmatmul.mubr.f32.vlgmr.msra.gmra.mrb[0].mxu1 %v348_v59 }
 0x21f   : > { %v438_v61 = vpop.f32.mrb[0].mxu1 }
 0x220   : > { %v439_v62 = vadd.f32 %v531_v60, %v438_v61  ;;  %v637_v63 = vpop.f32.mrb[1].mxu1 }
 0x222   : > { %v442_v0 = vadd.f32 %v439_v62, %v341_v53 }
 0x224   : > { %443 = vst [vmem:[%s249_s10] sm:$0xff] %v442_v0 }
 0x225 PF: > { %s17_s18 = sadd.s32 1, %s792_s18  }
 0x226   : > { %p14_p9 = scmp.ge.s32.totalorder %s17_s18, 4  }
 0x228   :  { %16 = sbr.rel (!%p14_p9) target bundleno = 2 (0x2), region = 79 }
 0x22f   :  { %463 = vsyncpa [#allocation3], 1 }
 0x230   :  { %465 = vsyncpa [#allocation3 + $0x1], 1 }
 0x231   :  { %466 = vsyncpa [#allocation5], 1 }

</bundles_post_ra>
